<compile_context>
chip_gen: v7x
topology: tpu7x:2x2x1
jax: 0.10.0
libtpu: 0.0.40
codegen_flags: <defaults>
</compile_context>

<pallas_src>
import functools

import jax
import jax.numpy as jnp
from jax.experimental import pallas as pl
from jax.experimental.pallas import tpu as pltpu


def _round_up(x, m):
    return ((x + m - 1) // m) * m


# --------------------------------------------------------------------------
# Kernel: fused 3-layer MLP head (BN already folded into weights/biases).
# --------------------------------------------------------------------------
def _head_kernel(x_ref, w1_ref, w2_ref, w3_ref, bias_ref, o_ref):
    h0 = w1_ref.shape[1]
    h1 = w2_ref.shape[1]
    pad_out = w3_ref.shape[1]

    # bf16 MXU inputs, f32 accumulation; bias-add / relu stay f32.
    x = x_ref[...].astype(jnp.bfloat16)

    # dense (BN0 + BN1 folded in) -> relu
    h = jnp.dot(x, w1_ref[...], preferred_element_type=jnp.float32)
    h = jnp.maximum(h + bias_ref[0:1, 0:h0], 0.0)

    # dense_1 (BN2 folded in) -> relu
    h = jnp.dot(h.astype(jnp.bfloat16), w2_ref[...],
                preferred_element_type=jnp.float32)
    h = jnp.maximum(h + bias_ref[1:2, 0:h1], 0.0)

    # out_proj (padded only to the next multiple of 8 output columns)
    out = jnp.dot(h.astype(jnp.bfloat16), w3_ref[...],
                  preferred_element_type=jnp.float32)
    o_ref[...] = (out + bias_ref[2:3, 0:pad_out]).astype(o_ref.dtype)


# --------------------------------------------------------------------------
# One-time offline parameter preparation (NOT in the per-call hot path).
# --------------------------------------------------------------------------
def _fold_bn(gamma, beta, running_mean, running_var, eps=1e-5):
    scale = gamma / jnp.sqrt(running_var + eps)
    shift = beta - running_mean * scale
    return scale, shift


def prepare_params(params, eps=1e-5):
    """Fold BatchNorms into the Linears, pre-transpose to [in, out], pad the
    output projection to a multiple of 8 columns, cast weights to bf16, and
    pack all (f32) biases into one sublane-aligned array.
    Returns (folded_dict, num_label)."""
    f32 = lambda a: jnp.asarray(a, jnp.float32)

    s0, t0 = _fold_bn(f32(params["g0"]), f32(params["be0"]),
                      f32(params["rm0"]), f32(params["rv0"]), eps)
    s1, t1 = _fold_bn(f32(params["g1"]), f32(params["be1"]),
                      f32(params["rm1"]), f32(params["rv1"]), eps)
    s2, t2 = _fold_bn(f32(params["g2"]), f32(params["be2"]),
                      f32(params["rm2"]), f32(params["rv2"]), eps)

    w1t = f32(params["w1"]).T          # [F,  H0]
    w2t = f32(params["w2"]).T          # [H0, H1]
    w3t = f32(params["w3"]).T          # [H1, L ]
    b1, b2, b3 = f32(params["b1"]), f32(params["b2"]), f32(params["b3"])

    # relu-in_1 = ((x*s0 + t0) @ W1^T + b1) * s1 + t1
    w1f = (s0[:, None] * w1t) * s1[None, :]
    b1f = (t0 @ w1t) * s1 + b1 * s1 + t1
    # relu-in_2 = (z1 @ W2^T + b2) * s2 + t2
    w2f = w2t * s2[None, :]
    b2f = b2 * s2 + t2

    h0_dim = w1t.shape[1]
    h1_dim, num_label = w3t.shape
    pad_out = _round_up(num_label, 8)          # narrow pad: 8 cols, not 128
    w3f = jnp.zeros((h1_dim, pad_out), jnp.float32).at[:, :num_label].set(w3t)
    b3f = jnp.zeros((pad_out,), jnp.float32).at[:num_label].set(b3)

    # Single packed bias array (one DMA descriptor), sublane/lane aligned.
    bw = _round_up(max(h0_dim, h1_dim, pad_out), 128)
    bias_pack = jnp.zeros((8, bw), jnp.float32)
    bias_pack = bias_pack.at[0, :b1f.shape[0]].set(b1f)
    bias_pack = bias_pack.at[1, :b2f.shape[0]].set(b2f)
    bias_pack = bias_pack.at[2, :pad_out].set(b3f)

    folded = dict(w1=w1f.astype(jnp.bfloat16),
                  w2=w2f.astype(jnp.bfloat16),
                  w3=w3f.astype(jnp.bfloat16),
                  bias=bias_pack)
    folded = jax.tree_util.tree_map(jax.block_until_ready, folded)
    return folded, int(num_label)


# --------------------------------------------------------------------------
# Pure-JAX version of the *kernel math* (folded bf16 weights, f32 accum).
# Used as (a) the optional small-batch XLA escape hatch and (b) a tight
# correctness reference for the Pallas path.
# --------------------------------------------------------------------------
def _folded_head_xla(x, folded, num_label):
    w1, w2, w3, bias = folded["w1"], folded["w2"], folded["w3"], folded["bias"]
    h = jnp.dot(x.astype(jnp.bfloat16), w1, preferred_element_type=jnp.float32)
    h = jnp.maximum(h + bias[0:1, :w1.shape[1]], 0.0)
    h = jnp.dot(h.astype(jnp.bfloat16), w2, preferred_element_type=jnp.float32)
    h = jnp.maximum(h + bias[1:2, :w2.shape[1]], 0.0)
    out = jnp.dot(h.astype(jnp.bfloat16), w3, preferred_element_type=jnp.float32)
    out = out + bias[2:3, :w3.shape[1]]
    return out[:, :num_label]


# --------------------------------------------------------------------------
# Per-call forward.
# --------------------------------------------------------------------------
def _pick_batch_tile(batch):
    """Batch tile: multiple of 8 (f32 sublanes); big enough to amortize the
    ~0.35us/step overhead; keeps >= 2 grid steps once B > 256 so the
    'parallel' batch axis can shard across v7x's two TensorCores."""
    b8 = _round_up(batch, 8)
    if b8 <= 256:
        return b8                               # single small block
    for tb in (4096, 2048, 1024, 512, 256):     # largest tile with >= 2 steps
        if b8 >= 2 * tb:
            return tb
    return _round_up((b8 + 1) // 2, 8)          # 256 < b8 < 512: two ~equal tiles


@functools.partial(jax.jit,
                   static_argnames=("num_label", "small_batch_xla_threshold"))
def classification_head(features, folded, num_label,
                        small_batch_xla_threshold=0):
    """features: [B, out_size] float32; folded: output of prepare_params()."""
    x = features.astype(jnp.float32)
    B, F = x.shape

    # Optional escape hatch: for tiny B the pallas dispatch dominates and
    # XLA's fused small-GEMM path is at parity (disabled by default so the
    # Pallas kernel is always exercised in this script).
    if B < small_batch_xla_threshold:
        return _folded_head_xla(x, folded, num_label)

    w1, w2, w3, bias = folded["w1"], folded["w2"], folded["w3"], folded["bias"]
    H0, H1 = w1.shape[1], w2.shape[1]
    pad_out = w3.shape[1]

    tb = _pick_batch_tile(B)
    steps = -(-B // tb)
    B_pad = steps * tb
    if B_pad != B:                               # ragged batch: pad rows, never
        x = jnp.pad(x, ((0, B_pad - B), (0, 0)))  # a single whole-B block

    # Deeper pipelining on the (only) batch-streamed operands once there are
    # enough grid steps for it to matter.
    spec_kwargs = dict(pipeline_mode=pl.Buffered(3)) if steps >= 3 else {}
    x_spec = pl.BlockSpec((tb, F), lambda i: (i, 0), **spec_kwargs)
    o_spec = pl.BlockSpec((tb, pad_out), lambda i: (i, 0), **spec_kwargs)

    flops = 2 * B_pad * (F * H0 + H0 * H1 + H1 * pad_out)
    bytes_accessed = (B_pad * F * 4                       # x read (f32)
                      + (w1.size + w2.size + w3.size) * 2  # bf16 weights
                      + bias.size * 4
                      + B_pad * pad_out * 4)               # output write

    out_padded = pl.pallas_call(
        _head_kernel,
        out_shape=jax.ShapeDtypeStruct((B_pad, pad_out), jnp.float32),
        grid=(steps,),
        in_specs=[
            x_spec,                                        # batch-tiled input
            pl.BlockSpec((F, H0), lambda i: (0, 0)),       # weights resident
            pl.BlockSpec((H0, H1), lambda i: (0, 0)),
            pl.BlockSpec((H1, pad_out), lambda i: (0, 0)),
            pl.BlockSpec(bias.shape, lambda i: (0, 0)),    # packed biases
        ],
        out_specs=o_spec,
        compiler_params=pltpu.CompilerParams(
            dimension_semantics=("parallel",)),
        cost_estimate=pl.CostEstimate(flops=flops, transcendentals=0,
                                      bytes_accessed=bytes_accessed),
    )(x, w1, w2, w3, bias)

    # Cheap now: pad_out is only round_up(num_label, 8) columns (not 128).
    return out_padded[:B, :num_label]


# --------------------------------------------------------------------------
# Parameter init (PyTorch layout) + pure-JAX f32 reference for checking.
# --------------------------------------------------------------------------
def init_params(key, out_size, hidden0, hidden1, num_label):
    ks = jax.random.split(key, 12)
    u = lambda k, shape, lim: jax.random.uniform(k, shape, jnp.float32, -lim, lim)

    def linear(kw, kb, fan_in, fan_out):
        lim = 1.0 / jnp.sqrt(fan_in)
        return u(kw, (fan_out, fan_in), lim), u(kb, (fan_out,), lim)

    w1, b1 = linear(ks[0], ks[1], out_size, hidden0)
    w2, b2 = linear(ks[2], ks[3], hidden0, hidden1)
    w3, b3 = linear(ks[4], ks[5], hidden1, num_label)

    def bn(kg, kb, dim):
        g = 1.0 + 0.1 * jax.random.normal(kg, (dim,), jnp.float32)
        b = 0.1 * jax.random.normal(kb, (dim,), jnp.float32)
        rm = 0.05 * jax.random.normal(jax.random.fold_in(kg, 7), (dim,), jnp.float32)
        rv = 1.0 + 0.1 * jax.random.uniform(jax.random.fold_in(kb, 7), (dim,), jnp.float32)
        return g, b, rm, rv

    g0, be0, rm0, rv0 = bn(ks[6], ks[7], out_size)
    g1, be1, rm1, rv1 = bn(ks[8], ks[9], hidden0)
    g2, be2, rm2, rv2 = bn(ks[10], ks[11], hidden1)

    return dict(w1=w1, b1=b1, w2=w2, b2=b2, w3=w3, b3=b3,
                g0=g0, be0=be0, rm0=rm0, rv0=rv0,
                g1=g1, be1=be1, rm1=rm1, rv1=rv1,
                g2=g2, be2=be2, rm2=rm2, rv2=rv2)


def _reference_f32(features, params):
    s0, t0 = _fold_bn(params["g0"], params["be0"], params["rm0"], params["rv0"])
    s1, t1 = _fold_bn(params["g1"], params["be1"], params["rm1"], params["rv1"])
    s2, t2 = _fold_bn(params["g2"], params["be2"], params["rm2"], params["rv2"])
    x = features * s0 + t0
    x = x @ params["w1"].T + params["b1"]
    x = jnp.maximum(x * s1 + t1, 0.0)
    x = x @ params["w2"].T + params["b2"]
    x = jnp.maximum(x * s2 + t2, 0.0)
    x = x @ params["w3"].T + params["b3"]
    return x


if __name__ == "__main__":
    # args.out_size=32, args.linear_layer_size=[64, 32], args.num_label=4
    B, OUT_SIZE, H0, H1, NUM_LABEL = 8, 32, 64, 32, 4

    key = jax.random.PRNGKey(0)
    k_feat, k_params = jax.random.split(key)
    features = jax.random.normal(k_feat, (B, OUT_SIZE), jnp.float32)
    params = init_params(k_params, OUT_SIZE, H0, H1, NUM_LABEL)

    folded, num_label = prepare_params(params)      # one-time offline prep

    # --- small batch (single grid step) ------------------------------------
    out = jax.block_until_ready(classification_head(features, folded, num_label))
    assert out.shape == (B, NUM_LABEL)

    # Tight check: identical math (folded bf16 weights, f32 accumulation).
    ref_folded = _folded_head_xla(features, folded, num_label)
    assert jnp.allclose(out, ref_folded, atol=1e-4, rtol=1e-4), \
        float(jnp.max(jnp.abs(out - ref_folded)))

    # Semantic check vs. the original f32 module math; looser tolerance covers
    # the bf16 weight/activation rounding introduced for MXU efficiency.
    ref_f32 = _reference_f32(features, params)
    assert jnp.allclose(out, ref_f32, atol=5e-2, rtol=5e-2), \
        float(jnp.max(jnp.abs(out - ref_f32)))

    # --- ragged batch (exercises grid = cdiv(B, tb) + row padding path) -----
    B2 = 300
    features2 = jax.random.normal(jax.random.fold_in(k_feat, 1),
                                  (B2, OUT_SIZE), jnp.float32)
    out2 = jax.block_until_ready(classification_head(features2, folded, num_label))
    assert out2.shape == (B2, NUM_LABEL)
    ref2 = _folded_head_xla(features2, folded, num_label)
    assert jnp.allclose(out2, ref2, atol=1e-4, rtol=1e-4), \
        float(jnp.max(jnp.abs(out2 - ref2)))

    print("KERNEL_OK")
</pallas_src>

<mosaic_0001>
module attributes {stable_mosaic.version = 11 : i64} {
  func.func @_head_kernel(%arg0: i32, %arg1: memref<8x32xf32, #tpu.memory_space<vmem>>, %arg2: memref<32x64xbf16, #tpu.memory_space<vmem>>, %arg3: memref<64x32xbf16, #tpu.memory_space<vmem>>, %arg4: memref<32x8xbf16, #tpu.memory_space<vmem>>, %arg5: memref<8x128xf32, #tpu.memory_space<vmem>>, %arg6: memref<8x8xf32, #tpu.memory_space<vmem>>) attributes {dimension_semantics = [#tpu.dimension_semantics<parallel>], iteration_bounds = array<i64: 1>, scalar_prefetch = 0 : i64, scratch_operands = 0 : i64, tpu.core_type = #tpu.core_type<tc>, window_params = [{transform_indices = @transform_0, window_bounds = array<i64: 8, 32>}, {pipeline_mode = #tpu.pipeline_mode<synchronous>, transform_indices = @transform_1, window_bounds = array<i64: 32, 64>}, {pipeline_mode = #tpu.pipeline_mode<synchronous>, transform_indices = @transform_2, window_bounds = array<i64: 64, 32>}, {pipeline_mode = #tpu.pipeline_mode<synchronous>, transform_indices = @transform_3, window_bounds = array<i64: 32, 8>}, {pipeline_mode = #tpu.pipeline_mode<synchronous>, transform_indices = @transform_4, window_bounds = array<i64: 8, 128>}, {transform_indices = @transform_5, window_bounds = array<i64: 8, 8>}]} {
    %c0 = arith.constant 0 : index
    %c0_0 = arith.constant 0 : index
    %0 = vector.load %arg1[%c0, %c0_0] : memref<8x32xf32, #tpu.memory_space<vmem>>, vector<8x32xf32>
    %1 = arith.truncf %0 : vector<8x32xf32> to vector<8x32xbf16>
    %c0_1 = arith.constant 0 : index
    %c0_2 = arith.constant 0 : index
    %2 = vector.load %arg2[%c0_1, %c0_2] : memref<32x64xbf16, #tpu.memory_space<vmem>>, vector<32x64xbf16>
    %cst = arith.constant dense<0.000000e+00> : vector<8x64xf32>
    %3 = tpu.matmul %1, %2, %cst {dimension_numbers = #tpu.dot_dimension_numbers<[1], [0], [0], [1], [0, 0, 1, 1], [], []>} : vector<8x32xbf16>, vector<32x64xbf16>, vector<8x64xf32> -> vector<8x64xf32>
    %c0_3 = arith.constant 0 : index
    %c0_4 = arith.constant 0 : index
    %4 = vector.load %arg5[%c0_3, %c0_4] : memref<8x128xf32, #tpu.memory_space<vmem>>, vector<1x64xf32>
    %5 = vector.broadcast %4 : vector<1x64xf32> to vector<8x64xf32>
    %6 = arith.addf %3, %5 : vector<8x64xf32>
    %cst_5 = arith.constant 0.000000e+00 : f32
    %7 = vector.broadcast %cst_5 : f32 to vector<8x64xf32>
    %8 = arith.maximumf %6, %7 : vector<8x64xf32>
    %9 = arith.truncf %8 : vector<8x64xf32> to vector<8x64xbf16>
    %c0_6 = arith.constant 0 : index
    %c0_7 = arith.constant 0 : index
    %10 = vector.load %arg3[%c0_6, %c0_7] : memref<64x32xbf16, #tpu.memory_space<vmem>>, vector<64x32xbf16>
    %cst_8 = arith.constant dense<0.000000e+00> : vector<8x32xf32>
    %11 = tpu.matmul %9, %10, %cst_8 {dimension_numbers = #tpu.dot_dimension_numbers<[1], [0], [0], [1], [0, 0, 1, 1], [], []>} : vector<8x64xbf16>, vector<64x32xbf16>, vector<8x32xf32> -> vector<8x32xf32>
    %c1 = arith.constant 1 : index
    %c0_9 = arith.constant 0 : index
    %12 = vector.load %arg5[%c1, %c0_9] : memref<8x128xf32, #tpu.memory_space<vmem>>, vector<1x32xf32>
    %13 = vector.broadcast %12 : vector<1x32xf32> to vector<8x32xf32>
    %14 = arith.addf %11, %13 : vector<8x32xf32>
    %cst_10 = arith.constant 0.000000e+00 : f32
    %15 = vector.broadcast %cst_10 : f32 to vector<8x32xf32>
    %16 = arith.maximumf %14, %15 : vector<8x32xf32>
    %17 = arith.truncf %16 : vector<8x32xf32> to vector<8x32xbf16>
    %c0_11 = arith.constant 0 : index
    %c0_12 = arith.constant 0 : index
    %18 = vector.load %arg4[%c0_11, %c0_12] : memref<32x8xbf16, #tpu.memory_space<vmem>>, vector<32x8xbf16>
    %cst_13 = arith.constant dense<0.000000e+00> : vector<8x8xf32>
    %19 = tpu.matmul %17, %18, %cst_13 {dimension_numbers = #tpu.dot_dimension_numbers<[1], [0], [0], [1], [0, 0, 1, 1], [], []>} : vector<8x32xbf16>, vector<32x8xbf16>, vector<8x8xf32> -> vector<8x8xf32>
    %c2 = arith.constant 2 : index
    %c0_14 = arith.constant 0 : index
    %20 = vector.load %arg5[%c2, %c0_14] : memref<8x128xf32, #tpu.memory_space<vmem>>, vector<1x8xf32>
    %21 = vector.broadcast %20 : vector<1x8xf32> to vector<8x8xf32>
    %22 = arith.addf %19, %21 : vector<8x8xf32>
    %c0_15 = arith.constant 0 : index
    %c0_16 = arith.constant 0 : index
    %23 = vector.load %arg6[%c0_15, %c0_16] : memref<8x8xf32, #tpu.memory_space<vmem>>, vector<8x8xf32>
    tpu.vector_store %arg6[%c0_15, %c0_16], %22 {strides = array<i32>} : memref<8x8xf32, #tpu.memory_space<vmem>>, vector<8x8xf32>,
    return
  }
  func.func @transform_0(%arg0: i32) -> (i32, i32) {
    %c0_i32 = arith.constant 0 : i32
    %c0_i32_0 = arith.constant 0 : i32
    return %arg0, %c0_i32 : i32, i32
  }
  func.func @transform_1(%arg0: i32) -> (i32, i32) {
    %c0_i32 = arith.constant 0 : i32
    %c0_i32_0 = arith.constant 0 : i32
    %c0_i32_1 = arith.constant 0 : i32
    return %c0_i32, %c0_i32_0 : i32, i32
  }
  func.func @transform_2(%arg0: i32) -> (i32, i32) {
    %c0_i32 = arith.constant 0 : i32
    %c0_i32_0 = arith.constant 0 : i32
    %c0_i32_1 = arith.constant 0 : i32
    return %c0_i32, %c0_i32_0 : i32, i32
  }
  func.func @transform_3(%arg0: i32) -> (i32, i32) {
    %c0_i32 = arith.constant 0 : i32
    %c0_i32_0 = arith.constant 0 : i32
    %c0_i32_1 = arith.constant 0 : i32
    return %c0_i32, %c0_i32_0 : i32, i32
  }
  func.func @transform_4(%arg0: i32) -> (i32, i32) {
    %c0_i32 = arith.constant 0 : i32
    %c0_i32_0 = arith.constant 0 : i32
    %c0_i32_1 = arith.constant 0 : i32
    return %c0_i32, %c0_i32_0 : i32, i32
  }
  func.func @transform_5(%arg0: i32) -> (i32, i32) {
    %c0_i32 = arith.constant 0 : i32
    %c0_i32_0 = arith.constant 0 : i32
    return %arg0, %c0_i32 : i32, i32
  }
}

</mosaic_0001>

<bundles_post_ra>
// kernel: classification_head.1
= control target key start
LH: loop header
LB: loop body
LE: loop exit
PB: predicated region body
PF: predicated region fallthrough
CT: control target
= control target key end

     0   :  { %v306_v0 = vmov 0.0   ;;  %vm307_vm0 = vmmov 0   ;;  %vm44_vm1 = vcmask 261120   ;;  %vm127_vm2 = vcmask 523264   ;;  %s382_s1 = inlined_call_operand.vmem [shape: bf16[32,64], index: 1, kind: input, shape index: {}]   ;;  %s383_s0 = inlined_call_operand.vmem [shape: f32[8,32], index: 0, kind: input, shape index: {}]   ;;  %s384_s2 = inlined_call_operand.vmem [shape: bf16[64,32], index: 2, kind: input, shape index: {}]   ;;  %s385_s3 = inlined_call_operand.vmem [shape: bf16[32,8], index: 3, kind: input, shape index: {}]   ;;  %s386_s4 = inlined_call_operand.vmem [shape: f32[8,128], index: 4, kind: input, shape index: {}]   ;;  %s387_s5 = inlined_call_operand.vmem [shape: f32[8,8], index: 5, kind: output, shape index: {}]  }
   0x1   :  { %268 = vmatprep.subr.bf16.mxu0 %v306_v0  ;;  %v298_v1 = vld [vmem:[%s382_s1] sm:$0xff]   ;;  %272 = vmatprep.mubr.msk.bf16.mxu0 %vm307_vm0, %v306_v0  ;;  %v299_v2 = vld [vmem:[%s382_s1 + $0x8] sm:$0xff]   ;;  %v302_v7 = vld [vmem:[%s384_s2 + $0x10] sm:$0xff]   ;;  %vm237_vm3 = vcmask 64512  }
   0x2   :  { %276 = vmatprep.subr.bf16.mxu1 %v306_v0  ;;  %284 = vmatprep.mubr.msk.bf16.mxu1 %vm307_vm0, %v306_v0  ;;  %v21_v3 = vld [vmem:[%s383_s0] sm:$0xff]  ;;  %v301_v5 = vld [vmem:[%s384_s2 + $0x8] sm:$0xff]   ;;  %v303_v8 = vld [vmem:[%s384_s2 + $0x18] sm:$0xff]  }
   0x3   :  { %269 = vmatpush3.bf16.msra.mxu0 %v298_v1  ;;  %v300_v4 = vld [vmem:[%s384_s2] sm:$0xff]   ;;  %v22_v6 = vpack.c.bf16 %v21_v3, %v21_v3  ;;  %v305_v18 = vld [vmem:[%s385_s3 + $0x8] sm:$0xff]  }
   0x4   :  { %270 = vmatprep.subr.bf16.mxu0 %v306_v0  ;;  %277 = vmatpush3.bf16.msra.mxu1 %v300_v4  ;;  %v304_v9 = vld [vmem:[%s385_s3] sm:$0xff]  }
   0x5   :  { %278 = vmatprep.subr.bf16.mxu1 %v306_v0  ;;  %v243_v10 = vld [vmem:[%s386_s4] ss:$0 sm:$0xff]  ;;  %v247_v19 = vld [vmem:[%s386_s4 + $0x1] ss:$0 sm:$0xff]  ;;  %v253_v27 = vld [vmem:[%s386_s4 + $0x2] ss:$0 sm:$0xff] }
   0x7   :  { %271 = vmatpush3.bf16.msra.mxu0 %v299_v2 }
   0x8   :  { %288 = vmatprep.subr.bf16.mxu0 %v306_v0  ;;  %279 = vmatpush3.bf16.msra.mxu1 %v301_v5 }
   0x9   :  { %280 = vmatprep.subr.bf16.mxu1 %v306_v0 }
   0xa   :  { %273 = vmatmul.mubr.msk.bf16.vlgmr.msra.gmra.mrb[0].mxu0 %vm44_vm1, %v22_v6 }
   0xb   :  { %292 = vmatprep.mubr.msk.bf16.mxu0 %vm307_vm0, %v306_v0  ;;  %289 = vmatpush3.bf16.msra.mxu0 %v304_v9 }
   0xc   :  { %281 = vmatpush3.bf16.msra.mxu1 %v302_v7  ;;  %290 = vmatprep.subr.bf16.mxu0 %v306_v0 }
   0xd   :  { %282 = vmatprep.subr.bf16.mxu1 %v306_v0 }
   0xf   :  { %291 = vmatpush3.bf16.msra.mxu0 %v305_v18 }
  0x10   :  { %283 = vmatpush3.bf16.msra.mxu1 %v303_v8 }
  0xdd   :  { %v82_v11 = vpop.f32.mrb[0].mxu0 }
  0xde   :  { %v83_v12 = vadd.f32 %v243_v10, %v82_v11  ;;  %v274_v13 = vpop.f32.mrb[1].mxu0 }
  0xdf   :  { %v85_v14 = vpop.f32.mrb[2].mxu0 }
  0xe0   :  { %v88_v15 = vmax.f32 %v83_v12, 0.0  ;;  %v275_v16 = vpop.f32.mrb[3].mxu0 }
  0xe2   :  { %v89_v17 = vpack.c.bf16 %v88_v15, %v88_v15 }
  0xe4   :  { %285 = vmatmul.mubr.msk.bf16.vlgmr.msra.gmra.mrb[0].mxu1 %vm127_vm2, %v89_v17 }
 0x1b7   :  { %v165_v20 = vpop.f32.mrb[0].mxu1 }
 0x1b8   :  { %v166_v21 = vadd.f32 %v247_v19, %v165_v20  ;;  %v286_v22 = vpop.f32.mrb[1].mxu1 }
 0x1b9   :  { %v168_v23 = vpop.f32.mrb[2].mxu1 }
 0x1ba   :  { %v171_v24 = vmax.f32 %v166_v21, 0.0  ;;  %v287_v25 = vpop.f32.mrb[3].mxu1 }
 0x1bc   :  { %v172_v26 = vpack.c.bf16 %v171_v24, %v171_v24 }
 0x1be   :  { %293 = vmatmul.mubr.msk.bf16.vlgmr.msra.gmra.mrb[4].mxu0 %vm44_vm1, %v172_v26 }
 0x291   :  { %v231_v28 = vpop.f32.mrb[4].mxu0 }
 0x292   :  { %v232_v29 = vadd.f32 %v253_v27, %v231_v28  ;;  %v294_v30 = vpop.f32.mrb[5].mxu0 }
 0x293   :  { %v234_v31 = vpop.f32.mrb[6].mxu0 }
 0x294   :  { %238 = vst.msk [vmem:[%s387_s5] sm:$0xff] %vm237_vm3, %v232_v29  ;;  %v295_v32 = vpop.f32.mrb[7].mxu0 }

</bundles_post_ra>
